<compile_context>
chip_gen: v6e
topology: v6e:2x2x1
jax: 0.10.0
libtpu: 0.0.40
codegen_flags: <defaults>
</compile_context>

<pallas_src>
import jax
import jax.numpy as jnp
from jax.experimental import pallas as pl
from jax.experimental.pallas import tpu as pltpu

N_STATE = 4
HIDDEN = 128


def mlp_kernel(x_ref, w1_ref, b1_ref, w2_ref, b2_ref, o_ref):
    # Layer 1 on the MXU: (TB, 4) @ (4, 128), bf16 operands, f32 accumulate.
    x = x_ref[...].astype(jnp.bfloat16)                          # (TB, N_STATE)
    h = jnp.dot(x, w1_ref[...], preferred_element_type=jnp.float32)
    h = jnp.maximum(h + b1_ref[...], 0.0)                        # (TB, 128) f32

    # Layer 2 on the MXU: (TB, 128) @ (128, 128), bf16 operands, f32 accumulate.
    y = jnp.dot(h.astype(jnp.bfloat16), w2_ref[...],
                preferred_element_type=jnp.float32)
    y = jnp.maximum(y + b2_ref[...], 0.0)
    o_ref[...] = y.astype(o_ref.dtype)                           # lane-dense (128-wide) store


def _round_up(n, m):
    return ((n + m - 1) // m) * m


def _choose_batch_tile(batch):
    """Pick a batch tile that (a) minimizes tail padding, (b) gives >=2 grid steps for large
    batches (so v7x's 2 TensorCores both get work), (c) stays <= 4096 rows per tile.
    Per-tile VMEM: x block lane-pads (tb,4)->(tb,128) f32 = 2 MB @ tb=4096, out 2 MB, weights
    tiny -> ~8-10 MB double-buffered, well inside v7x's 32 MiB scoped VMEM."""
    b8 = _round_up(batch, 8)         # f32 sublane alignment
    CAP = 4096
    MIN_SPLIT = 512                  # below this, one tile; launch/DMA overhead dominates anyway
    if b8 <= MIN_SPLIT:
        return b8
    n_tiles = max(2, pl.cdiv(b8, CAP))
    return _round_up(pl.cdiv(b8, n_tiles), 8)


def network_forward(state, w1, b1, w2, b2, out_dtype=jnp.float32):
    """state: (B, n_state) f32. Returns (B, 128) in out_dtype (f32 default; bf16 halves the
    dominant HBM write stream on v5e/v6e if the consumer tolerates it)."""
    B = state.shape[0]
    tb = _choose_batch_tile(B)
    grid = pl.cdiv(B, tb)
    b_pad = grid * tb
    if b_pad != B:
        # Pad only the small tail (<= 8*grid rows); extra rows are sliced off below.
        state = jnp.pad(state, ((0, b_pad - B), (0, 0)))

    # Pre-cast resident weights to bf16 once (MXU-native on v5e/v6e/v7x); biases stay f32 and
    # are added to the f32 accumulator.
    w1_bf = w1.astype(jnp.bfloat16)
    w2_bf = w2.astype(jnp.bfloat16)

    out = pl.pallas_call(
        mlp_kernel,
        out_shape=jax.ShapeDtypeStruct((b_pad, HIDDEN), out_dtype),
        grid_spec=pl.GridSpec(
            grid=(grid,),
            in_specs=[
                pl.BlockSpec((tb, N_STATE), lambda i: (i, 0)),       # x: tiled over batch
                pl.BlockSpec((N_STATE, HIDDEN), lambda i: (0, 0)),   # w1 (bf16): resident
                pl.BlockSpec((1, HIDDEN), lambda i: (0, 0)),         # b1 (f32): resident
                pl.BlockSpec((HIDDEN, HIDDEN), lambda i: (0, 0)),    # w2 (bf16): resident
                pl.BlockSpec((1, HIDDEN), lambda i: (0, 0)),         # b2 (f32): resident
            ],
            out_specs=pl.BlockSpec((tb, HIDDEN), lambda i: (i, 0)),  # lane-dense (128) output
        ),
        compiler_params=pltpu.CompilerParams(
            # Independent batch tiles -> parallel (shards across v7x's 2 TCs; harmless on v5e/v6e).
            dimension_semantics=("parallel",),
            vmem_limit_bytes=32 * 1024 * 1024,
        ),
    )(state, w1_bf, b1, w2_bf, b2)

    if b_pad != B:
        out = out[:B]
    return out


def reference_forward(state, w1, b1, w2, b2):
    """Pure-JAX f32 reference (matches the PyTorch module exactly)."""
    h = jnp.maximum(state @ w1 + b1, 0.0)
    return jnp.maximum(h @ w2 + b2, 0.0)


def reference_forward_bf16(state, w1, b1, w2, b2):
    """Reference with the same bf16-operand / f32-accumulate numerics as the kernel."""
    h = jnp.dot(state.astype(jnp.bfloat16), w1.astype(jnp.bfloat16),
                preferred_element_type=jnp.float32)
    h = jnp.maximum(h + b1, 0.0)
    y = jnp.dot(h.astype(jnp.bfloat16), w2.astype(jnp.bfloat16),
                preferred_element_type=jnp.float32)
    return jnp.maximum(y + b2, 0.0)


def network_apply(state, w1, b1, w2, b2, min_pallas_batch=256):
    """Dispatcher: for tiny RL-sized batches the pallas_call launch/DMA overhead dominates,
    so fall back to plain XLA; use the kernel only above a batch threshold."""
    if state.shape[0] < min_pallas_batch:
        return reference_forward(state, w1, b1, w2, b2)
    return network_forward(state, w1, b1, w2, b2)


def init_params(key, n_state=N_STATE, hidden=HIDDEN):
    """Deterministic init mimicking PyTorch nn.Linear default (uniform +-1/sqrt(fan_in)).
    Stored as (in_features, out_features) so the kernel does x @ W (== PyTorch x @ W.T)."""
    k1, k2, k3, k4 = jax.random.split(key, 4)
    bound1 = 1.0 / jnp.sqrt(n_state)
    bound2 = 1.0 / jnp.sqrt(hidden)
    w1 = jax.random.uniform(k1, (n_state, hidden), jnp.float32, -bound1, bound1)
    b1 = jax.random.uniform(k2, (1, hidden), jnp.float32, -bound1, bound1)
    w2 = jax.random.uniform(k3, (hidden, hidden), jnp.float32, -bound2, bound2)
    b2 = jax.random.uniform(k4, (1, hidden), jnp.float32, -bound2, bound2)
    return w1, b1, w2, b2


if __name__ == "__main__":
    key = jax.random.PRNGKey(0)
    pkey, xkey1, xkey2 = jax.random.split(key, 3)
    w1, b1, w2, b2 = init_params(pkey)

    # Small demo batch (single tile, grid=1) — kernel path exercised directly.
    batch = 8
    state = jax.random.normal(xkey1, (batch, N_STATE), jnp.float32)
    out = jax.block_until_ready(network_forward(state, w1, b1, w2, b2))
    ref_bf16 = reference_forward_bf16(state, w1, b1, w2, b2)
    ref_f32 = reference_forward(state, w1, b1, w2, b2)
    assert out.shape == (batch, HIDDEN)
    # Tight check vs a numerics-matched (bf16-operand, f32-accumulate) reference ...
    assert jnp.allclose(out, ref_bf16, atol=1e-3, rtol=1e-3), "mismatch vs bf16-matched ref (B=8)"
    # ... and a sanity check vs the exact f32 module reference (bf16 operand rounding only).
    assert jnp.allclose(out, ref_f32, atol=1.5e-1, rtol=5e-2), "mismatch vs f32 reference (B=8)"

    # Exercise the multi-tile path (grid=2, >=2 parallel steps, 12-row tail pad at B=2052).
    batch2 = 2052
    state2 = jax.random.normal(xkey2, (batch2, N_STATE), jnp.float32)
    out2 = jax.block_until_ready(network_forward(state2, w1, b1, w2, b2))
    ref2_bf16 = reference_forward_bf16(state2, w1, b1, w2, b2)
    ref2_f32 = reference_forward(state2, w1, b1, w2, b2)
    assert out2.shape == (batch2, HIDDEN)
    assert jnp.allclose(out2, ref2_bf16, atol=1e-3, rtol=1e-3), "mismatch vs bf16-matched ref (B=2052)"
    assert jnp.allclose(out2, ref2_f32, atol=1.5e-1, rtol=5e-2), "mismatch vs f32 reference (B=2052)"

    print("KERNEL_OK")
</pallas_src>

<mosaic_0001>
module attributes {stable_mosaic.version = 11 : i64} {
  func.func @mlp_kernel(%arg0: i32, %arg1: memref<8x4xf32, #tpu.memory_space<vmem>>, %arg2: memref<4x128xbf16, #tpu.memory_space<vmem>>, %arg3: memref<1x128xf32, #tpu.memory_space<vmem>>, %arg4: memref<128x128xbf16, #tpu.memory_space<vmem>>, %arg5: memref<1x128xf32, #tpu.memory_space<vmem>>, %arg6: memref<8x128xf32, #tpu.memory_space<vmem>>) attributes {dimension_semantics = [#tpu.dimension_semantics<parallel>], iteration_bounds = array<i64: 1>, scalar_prefetch = 0 : i64, scratch_operands = 0 : i64, tpu.core_type = #tpu.core_type<tc>, window_params = [{transform_indices = @transform_0, window_bounds = array<i64: 8, 4>}, {pipeline_mode = #tpu.pipeline_mode<synchronous>, transform_indices = @transform_1, window_bounds = array<i64: 4, 128>}, {pipeline_mode = #tpu.pipeline_mode<synchronous>, transform_indices = @transform_2, window_bounds = array<i64: 1, 128>}, {pipeline_mode = #tpu.pipeline_mode<synchronous>, transform_indices = @transform_3, window_bounds = array<i64: 128, 128>}, {pipeline_mode = #tpu.pipeline_mode<synchronous>, transform_indices = @transform_4, window_bounds = array<i64: 1, 128>}, {transform_indices = @transform_5, window_bounds = array<i64: 8, 128>}]} {
    %c0 = arith.constant 0 : index
    %c0_0 = arith.constant 0 : index
    %0 = vector.load %arg1[%c0, %c0_0] : memref<8x4xf32, #tpu.memory_space<vmem>>, vector<8x4xf32>
    %1 = arith.truncf %0 : vector<8x4xf32> to vector<8x4xbf16>
    %c0_1 = arith.constant 0 : index
    %c0_2 = arith.constant 0 : index
    %2 = vector.load %arg2[%c0_1, %c0_2] : memref<4x128xbf16, #tpu.memory_space<vmem>>, vector<4x128xbf16>
    %cst = arith.constant dense<0.000000e+00> : vector<8x128xf32>
    %3 = tpu.matmul %1, %2, %cst {dimension_numbers = #tpu.dot_dimension_numbers<[1], [0], [0], [1], [0, 0, 1, 1], [], []>} : vector<8x4xbf16>, vector<4x128xbf16>, vector<8x128xf32> -> vector<8x128xf32>
    %c0_3 = arith.constant 0 : index
    %c0_4 = arith.constant 0 : index
    %4 = vector.load %arg3[%c0_3, %c0_4] : memref<1x128xf32, #tpu.memory_space<vmem>>, vector<1x128xf32>
    %5 = vector.broadcast %4 : vector<1x128xf32> to vector<8x128xf32>
    %6 = arith.addf %3, %5 : vector<8x128xf32>
    %cst_5 = arith.constant 0.000000e+00 : f32
    %7 = vector.broadcast %cst_5 : f32 to vector<8x128xf32>
    %8 = arith.maximumf %6, %7 : vector<8x128xf32>
    %9 = arith.truncf %8 : vector<8x128xf32> to vector<8x128xbf16>
    %c0_6 = arith.constant 0 : index
    %c0_7 = arith.constant 0 : index
    %10 = vector.load %arg4[%c0_6, %c0_7] : memref<128x128xbf16, #tpu.memory_space<vmem>>, vector<128x128xbf16>
    %cst_8 = arith.constant dense<0.000000e+00> : vector<8x128xf32>
    %11 = tpu.matmul %9, %10, %cst_8 {dimension_numbers = #tpu.dot_dimension_numbers<[1], [0], [0], [1], [0, 0, 1, 1], [], []>} : vector<8x128xbf16>, vector<128x128xbf16>, vector<8x128xf32> -> vector<8x128xf32>
    %c0_9 = arith.constant 0 : index
    %c0_10 = arith.constant 0 : index
    %12 = vector.load %arg5[%c0_9, %c0_10] : memref<1x128xf32, #tpu.memory_space<vmem>>, vector<1x128xf32>
    %13 = vector.broadcast %12 : vector<1x128xf32> to vector<8x128xf32>
    %14 = arith.addf %11, %13 : vector<8x128xf32>
    %cst_11 = arith.constant 0.000000e+00 : f32
    %15 = vector.broadcast %cst_11 : f32 to vector<8x128xf32>
    %16 = arith.maximumf %14, %15 : vector<8x128xf32>
    %c0_12 = arith.constant 0 : index
    %c0_13 = arith.constant 0 : index
    %17 = vector.load %arg6[%c0_12, %c0_13] : memref<8x128xf32, #tpu.memory_space<vmem>>, vector<8x128xf32>
    tpu.vector_store %arg6[%c0_12, %c0_13], %16 {strides = array<i32>} : memref<8x128xf32, #tpu.memory_space<vmem>>, vector<8x128xf32>,
    return
  }
  func.func @transform_0(%arg0: i32) -> (i32, i32) {
    %c0_i32 = arith.constant 0 : i32
    %c0_i32_0 = arith.constant 0 : i32
    return %arg0, %c0_i32 : i32, i32
  }
  func.func @transform_1(%arg0: i32) -> (i32, i32) {
    %c0_i32 = arith.constant 0 : i32
    %c0_i32_0 = arith.constant 0 : i32
    %c0_i32_1 = arith.constant 0 : i32
    return %c0_i32, %c0_i32_0 : i32, i32
  }
  func.func @transform_2(%arg0: i32) -> (i32, i32) {
    %c0_i32 = arith.constant 0 : i32
    %c0_i32_0 = arith.constant 0 : i32
    %c0_i32_1 = arith.constant 0 : i32
    return %c0_i32, %c0_i32_0 : i32, i32
  }
  func.func @transform_3(%arg0: i32) -> (i32, i32) {
    %c0_i32 = arith.constant 0 : i32
    %c0_i32_0 = arith.constant 0 : i32
    %c0_i32_1 = arith.constant 0 : i32
    return %c0_i32, %c0_i32_0 : i32, i32
  }
  func.func @transform_4(%arg0: i32) -> (i32, i32) {
    %c0_i32 = arith.constant 0 : i32
    %c0_i32_0 = arith.constant 0 : i32
    %c0_i32_1 = arith.constant 0 : i32
    return %c0_i32, %c0_i32_0 : i32, i32
  }
  func.func @transform_5(%arg0: i32) -> (i32, i32) {
    %c0_i32 = arith.constant 0 : i32
    %c0_i32_0 = arith.constant 0 : i32
    return %arg0, %c0_i32 : i32, i32
  }
}

</mosaic_0001>

<bundles_post_ra>
// kernel: tpu_custom_call.1
= control target key start
LH: loop header
LB: loop body
LE: loop exit
PB: predicated region body
PF: predicated region fallthrough
CT: control target
= control target key end

     0   :  { %10 = vsyncpa [#allocation3], 0  ;;  %s384_s0 = inlined_call_operand.vmem [shape: f32[8,4], index: 0, kind: input, shape index: {}]   ;;  %s385_s1 = inlined_call_operand.vmem [shape: bf16[4,128], index: 1, kind: input, shape index: {}]   ;;  %s386_s2 = inlined_call_operand.vmem [shape: f32[1,128], index: 2, kind: input, shape index: {}]   ;;  %s387_s3 = inlined_call_operand.hbm [shape: bf16[128,128], index: 3, kind: input, shape index: {}]   ;;  %s388_s4 = inlined_call_operand.vmem [shape: f32[1,128], index: 4, kind: input, shape index: {}]   ;;  %s389_s5 = inlined_call_operand.hbm [shape: f32[8,128], index: 5, kind: output, shape index: {}]  }
   0x1   :  { %11 = vsyncpa [#allocation4], 0  ;;  %s330_s18 = smov [#allocation2]  }
   0x2   :  { %s23_s19 = sshll.u32 %s330_s18, 4  ;;  %s24_s19 = int_to_ptr.vmem [resolvable:$true] %s23_s19 }
   0x3   :  { %s294_s20 = scalar_lea.vmem %s24_s19, 1024  ;;  %p299_p1 = scmp.lt.s32.totalorder %s24_s19, %s24_s19 }
   0x4   :  { %p295_p0 = scmp.ne.s32.totalorder %s24_s19, %s294_s20  ;;  %p300_p2 = scmp.lt.s32.totalorder %s294_s20, %s294_s20 }
   0x6   :  { %p301_p3 = por %p300_p2, %p299_p1 }
   0x8   :  { %p302_p4 = pnand %p301_p3, %p295_p0 }
   0xa   :  { %305 = shalt.err (!%p302_p4)
}
   0xb   :  { %s331_s21 = smov 64   ;;  %s332_s22 = smov 4  }
   0xc   :  { %29 = dma.hbm_to_vmem [thread:$0]  %s387_s3, 1024, %s24_s19, [#allocation3], %s331_s21, %s331_s21, %s332_s22  }
   0xd   :  { %326 = dma.done.wait [#allocation3], 1024  }
   0xe   :  { %327 = vsyncadd [#allocation3], 4294966272  ;;  %v333_v0 = vmov 0.0   ;;  %vm334_vm0 = vmmov 0   ;;  %vm50_vm1 = vcmask 1041408   ;;  %v36_v2 = vld [vmem:[%s384_s0] sm:$0xff] }
   0xf   :  { %246 = vmatprep.subr.bf16.mxu0 %v333_v0  ;;  %248 = vmatprep.mubr.msk.bf16.mxu0 %vm334_vm0, %v333_v0  ;;  %v38_v1 = vld [vmem:[%s385_s1] sm:$0x3]  ;;  %v37_v4 = vpack.c.bf16 %v36_v2, %v36_v2  ;;  %v278_v5 = vld [vmem:[#allocation2 + $0x38] sm:$0xff]   ;;  %vm46_vm2 = vcmask 31744   ;;  %v279_v6 = vld [vmem:[#allocation2 + $0x30] sm:$0xff]   ;;  %s335_s30 = smov [#allocation5]  }
  0x10   :  { %252 = vmatprep.subr.bf16.mxu1 %v333_v0  ;;  %268 = vmatprep.mubr.msk.bf16.mxu1 %vm334_vm0, %v333_v0  ;;  %v52_v3 = vsel %vm50_vm1, %v38_v1, 0  ;;  %v280_v7 = vld [vmem:[#allocation2 + $0x28] sm:$0xff]   ;;  %v281_v8 = vld [vmem:[#allocation2 + $0x20] sm:$0xff]   ;;  %v282_v9 = vld [vmem:[#allocation2 + $0x18] sm:$0xff]   ;;  %s215_s6 = sshll.u32 %s335_s30, 4  ;;  %s216_s6 = int_to_ptr.vmem [resolvable:$true] %s215_s6 }
  0x11   :  { %247 = vmatpush3.bf16.msra.mxu0 %v52_v3  ;;  %253 = vmatpush3.bf16.msra.mxu1 %v278_v5  ;;  %v283_v10 = vld [vmem:[#allocation2 + $0x10] sm:$0xff]   ;;  %v284_v11 = vld [vmem:[#allocation2 + $0x8] sm:$0xff]   ;;  %v285_v12 = vld [vmem:[#allocation2] sm:$0xff]   ;;  %p311_p6 = scmp.lt.s32.totalorder %s216_s6, %s216_s6 }
  0x12   :  { %254 = vmatprep.subr.bf16.mxu1 %v333_v0  ;;  %v224_v13 = vld [vmem:[%s386_s2] ss:$0 sm:$0xff]  ;;  %s306_s2 = scalar_lea.vmem %s216_s6, 128 }
  0x13   :  { %v226_v21 = vld [vmem:[%s388_s4] ss:$0 sm:$0xff]  ;;  %p307_p5 = scmp.ne.s32.totalorder %s216_s6, %s306_s2  ;;  %p312_p7 = scmp.lt.s32.totalorder %s306_s2, %s306_s2 }
  0x14   :  { %249 = vmatmul.mubr.msk.bf16.vlgmr.msra.gmra.mxu0 %vm46_vm2, %v37_v4 }
  0x15   :  { %255 = vmatpush3.bf16.msra.mxu1 %v279_v6  ;;  %p313_p8 = por %p312_p7, %p311_p6 }
  0x16   :  { %256 = vmatprep.subr.bf16.mxu1 %v333_v0 }
  0x17   :  { %p314_p9 = pnand %p313_p8, %p307_p5 }
  0x19   :  { %257 = vmatpush3.bf16.msra.mxu1 %v280_v7 }
  0x1a   :  { %258 = vmatprep.subr.bf16.mxu1 %v333_v0 }
  0x1d   :  { %259 = vmatpush3.bf16.msra.mxu1 %v281_v8 }
  0x1e   :  { %260 = vmatprep.subr.bf16.mxu1 %v333_v0 }
  0x21   :  { %261 = vmatpush3.bf16.msra.mxu1 %v282_v9 }
  0x22   :  { %262 = vmatprep.subr.bf16.mxu1 %v333_v0 }
  0x25   :  { %263 = vmatpush3.bf16.msra.mxu1 %v283_v10 }
  0x26   :  { %264 = vmatprep.subr.bf16.mxu1 %v333_v0 }
  0x29   :  { %265 = vmatpush3.bf16.msra.mxu1 %v284_v11 }
  0x2a   :  { %266 = vmatprep.subr.bf16.mxu1 %v333_v0 }
  0x2d   :  { %267 = vmatpush3.bf16.msra.mxu1 %v285_v12 }
  0xd4   :  { %v88_v14 = vpop.f32.mrf.mxu0 }
  0xd5   :  { %v89_v15 = vadd.f32 %v224_v13, %v88_v14 }
  0xd6   :  { %v250_v16 = vpop.f32.mrf.mxu0 }
  0xd7   :  { %v94_v17 = vmax.f32 %v89_v15, 0.0 }
  0xd8   :  { %v91_v18 = vpop.f32.mrf.mxu0 }
  0xd9   :  { %v95_v19 = vpack.c.bf16 %v94_v17, %v94_v17 }
  0xda   :  { %v251_v20 = vpop.f32.mrf.mxu0 }
  0xdb   :  { %269 = vmatmul.mubr.bf16.vlgmr.msra.gmra.mxu1 %v95_v19 }
 0x19b   :  { %v201_v22 = vpop.f32.mrf.mxu1 }
 0x19c   :  { %v202_v23 = vadd.f32 %v226_v21, %v201_v22 }
 0x19d   :  { %v270_v24 = vpop.f32.mrf.mxu1 }
 0x19e   :  { %v207_v25 = vmax.f32 %v202_v23, 0.0 }
 0x19f   :  { %v204_v26 = vpop.f32.mrf.mxu1 }
 0x1a0   :  { %208 = vst [vmem:[#allocation5] sm:$0xff] %v207_v25 }
 0x1a1   :  { %v271_v27 = vpop.f32.mrf.mxu1 }
 0x1a2   :  { %317 = shalt.err (!%p314_p9)
}
 0x1a3   :  { %218 = dma.vmem_to_hbm [thread:$0]  %s216_s6, 128, %s389_s5, [#allocation4]  }
 0x1a4   :  { %328 = dma.done.wait [#allocation4], 128  }
 0x1a5   :  { %329 = vsyncadd [#allocation4], 4294967168 }
 0x1a6   :  { %222 = vsyncpa [#allocation3], 1 }
 0x1a7   :  { %223 = vsyncpa [#allocation4], 1 }

</bundles_post_ra>
